<compile_context>
chip_gen: v7x
topology: tpu7x:2x2x1
jax: 0.10.0
libtpu: 0.0.40
codegen_flags: <defaults>
</compile_context>

<pallas_src>
import functools

import jax
import jax.numpy as jnp
from jax.experimental import pallas as pl
from jax.experimental.pallas import tpu as pltpu

LANES = 128
SUBLANES = 8
MAX_TILE_ROWS = 2048   # ~1 MiB f32 block per input; good across v5e/v6e/v7x.


def _round_up(x, m):
    return ((x + m - 1) // m) * m


def _num_tensorcores():
    """2 for multi-TensorCore chips (v7x / v4 / v5p), else 1."""
    try:
        kind = jax.devices()[0].device_kind.lower()
    except Exception:
        return 1
    if ("v7" in kind) or ("v4" in kind) or ("v5p" in kind):
        return 2
    return 1


def _tversky_sums_kernel(x_ref, t_ref, pt_ref, p_ref, t_sum_ref, *,
                         inner_steps, tile_rows, chunk_rows, total_rows,
                         need_mask, use_mxu_fold):
    s = pl.program_id(0)   # parallel split (per-TensorCore on multi-TC chips)
    i = pl.program_id(1)   # reduction step within the split

    @pl.when(i == 0)
    def _init():
        pt_ref[...] = jnp.zeros_like(pt_ref)
        p_ref[...] = jnp.zeros_like(p_ref)
        t_sum_ref[...] = jnp.zeros_like(t_sum_ref)

    # Logical first row of this block (UN-clamped: programs past the slab end
    # are fully masked to zero, so clamped/duplicated DMA blocks are harmless).
    block_row0 = (s * inner_steps + i) * tile_rows

    if use_mxu_fold:
        # Constant (8, chunk_rows) matrix with ones in row 0: jnp.dot folds the
        # leading axis on the otherwise-idle MXU; sums land in row 0 of the
        # (8,128) result (rows 1..7 stay exactly zero).
        e_row = jax.lax.broadcasted_iota(jnp.int32, (SUBLANES, chunk_rows), 0)
        fold_e = (e_row == 0).astype(jnp.float32)

        def fold(v):
            return jnp.dot(fold_e, v, preferred_element_type=jnp.float32)
    else:
        # Leading-axis reduction = pure elementwise VPU adds over vregs.
        def fold(v):
            return jnp.sum(v.reshape(-1, SUBLANES, LANES), axis=0)

    n_chunks = tile_rows // chunk_rows

    def body(c, carry):
        acc_pt, acc_p, acc_t = carry
        r0 = pl.multiple_of(c * chunk_rows, chunk_rows)
        x = x_ref[pl.ds(r0, chunk_rows), :].astype(jnp.float32)
        t = t_ref[pl.ds(r0, chunk_rows), :].astype(jnp.float32)
        # Single-transcendental sigmoid; the -inf lane padding maps to p == 0.
        p = 0.5 * jnp.tanh(0.5 * x) + 0.5
        if need_mask:
            # Row-only guard for blocks extending past the slab.  Selects (not
            # mask multiplies) so NaN garbage in OOB rows is dropped safely.
            row = jax.lax.broadcasted_iota(jnp.int32, (chunk_rows, LANES), 0)
            valid = (block_row0 + r0 + row) < total_rows
            p = jnp.where(valid, p, 0.0)
            t = jnp.where(valid, t, 0.0)
        pt = p * t
        return (acc_pt + fold(pt), acc_p + fold(p), acc_t + fold(t))

    zero = jnp.zeros((SUBLANES, LANES), jnp.float32)
    acc_pt, acc_p, acc_t = jax.lax.fori_loop(
        0, n_chunks, body, (zero, zero, zero), unroll=True)

    pt_ref[...] += acc_pt
    p_ref[...] += acc_p
    t_sum_ref[...] += acc_t


def tversky_loss(logits, targets, alpha=0.9, beta=0.1, eps=1e-6):
    """Pallas TPU implementation of TverskyLoss.forward (returns scalar f32)."""
    assert logits.shape == targets.shape
    n = int(logits.size)

    # Keep original dtypes (kernel casts to f32): bf16 logits / narrow targets
    # stream straight from HBM without an extra XLA convert pass.
    x_flat = jnp.ravel(logits)
    t_flat = jnp.ravel(targets)
    if not jnp.issubdtype(x_flat.dtype, jnp.floating):
        x_flat = x_flat.astype(jnp.float32)   # rare; keeps -inf padding valid

    # Lane-dense (rows, 128) slab; rows rounded up to a sublane multiple.
    rows = max(_round_up(-(-n // LANES), SUBLANES), SUBLANES)
    pad = rows * LANES - n
    if pad:
        # -inf logit padding -> sigmoid == 0 exactly, target padding == 0, so
        # padded elements contribute nothing to any sum (no lane mask needed).
        x_flat = jnp.pad(x_flat, (0, pad), constant_values=float("-inf"))
        t_flat = jnp.pad(t_flat, (0, pad))
    x2d = x_flat.reshape(rows, LANES)
    t2d = t_flat.reshape(rows, LANES)
    # TODO(synk): for strided/transposed producers verify in HLO that this
    # ravel/reshape is layout-free; otherwise tile the producer's native shape.

    tile_rows = min(MAX_TILE_ROWS, rows)           # rows is a multiple of 8
    total_blocks = -(-rows // tile_rows)
    num_splits = _num_tensorcores() if total_blocks >= 2 else 1
    inner_steps = -(-total_blocks // num_splits)
    last_block = total_blocks - 1
    # Mask only when the grid overshoots the slab (partial or duplicated blocks).
    need_mask = (num_splits * inner_steps * tile_rows) != rows

    # Sub-chunk size for the in-kernel fori_loop: largest preferred divisor.
    chunk_rows = tile_rows
    for cand in (256, 512, 128, 64, 32, 16, 8):
        if tile_rows % cand == 0:
            chunk_rows = cand
            break
    use_mxu_fold = chunk_rows >= 128

    kernel = functools.partial(
        _tversky_sums_kernel,
        inner_steps=inner_steps,
        tile_rows=tile_rows,
        chunk_rows=chunk_rows,
        total_rows=rows,
        need_mask=need_mask,
        use_mxu_fold=use_mxu_fold,
    )

    part_shape = jax.ShapeDtypeStruct((num_splits * SUBLANES, LANES), jnp.float32)
    if num_splits * inner_steps > total_blocks:
        # Clamp so no block ever starts out of bounds; duplicated blocks are
        # fully masked inside the kernel (need_mask is True in this case).
        in_map = lambda s, i: (jnp.minimum(s * inner_steps + i, last_block), 0)
    else:
        in_map = lambda s, i: (s * inner_steps + i, 0)
    out_map = lambda s, i: (s, 0)

    sum_pt_p, sum_p_p, sum_t_p = pl.pallas_call(
        kernel,
        out_shape=(part_shape, part_shape, part_shape),
        grid_spec=pltpu.PrefetchScalarGridSpec(
            num_scalar_prefetch=0,
            grid=(num_splits, inner_steps),
            in_specs=[
                pl.BlockSpec((tile_rows, LANES), in_map),
                pl.BlockSpec((tile_rows, LANES), in_map),
            ],
            out_specs=[
                pl.BlockSpec((SUBLANES, LANES), out_map),
                pl.BlockSpec((SUBLANES, LANES), out_map),
                pl.BlockSpec((SUBLANES, LANES), out_map),
            ],
        ),
        compiler_params=pltpu.CompilerParams(
            dimension_semantics=("parallel", "arbitrary"),
        ),
    )(x2d, t2d)

    # Tiny epilogue: derive fp/fn from the three streamed sums.  (Subtraction
    # can cancel digits when fp/fn << tp; eps keeps the final index stable.)
    tp = jnp.sum(sum_pt_p)
    sum_p = jnp.sum(sum_p_p)
    sum_t = jnp.sum(sum_t_p)
    fp = sum_p - tp
    fn = sum_t - tp
    tversky_index = (tp + eps) / (tp + alpha * fp + beta * fn + eps)
    return 1.0 - tversky_index


def _reference(logits, targets, alpha=0.9, beta=0.1, eps=1e-6):
    probs = jax.nn.sigmoid(logits.astype(jnp.float32))
    p = probs.reshape(-1)
    t = targets.astype(jnp.float32).reshape(-1)
    tp = jnp.sum(p * t)
    fp = jnp.sum(p * (1 - t))
    fn = jnp.sum((1 - p) * t)
    return 1 - (tp + eps) / (tp + alpha * fp + beta * fn + eps)


if __name__ == "__main__":
    key = jax.random.PRNGKey(0)
    k1, k2 = jax.random.split(key)

    # Small shapes consistent with a segmentation-style loss: NCHW logits.
    logits = jax.random.normal(k1, (2, 4, 16, 16), dtype=jnp.float32)
    targets = (jax.random.uniform(k2, (2, 4, 16, 16)) > 0.5).astype(jnp.float32)

    loss = tversky_loss(logits, targets)
    loss = jax.block_until_ready(loss)

    ref = _reference(logits, targets)
    assert jnp.allclose(loss, ref, atol=1e-4, rtol=1e-4), (loss, ref)

    print("KERNEL_OK")
</pallas_src>

<mosaic_0001>
module attributes {stable_mosaic.version = 11 : i64} {
  func.func @_tversky_sums_kernel(%arg0: i32, %arg1: i32, %arg2: memref<16x128xf32, #tpu.memory_space<vmem>>, %arg3: memref<16x128xf32, #tpu.memory_space<vmem>>, %arg4: memref<8x128xf32, #tpu.memory_space<vmem>>, %arg5: memref<8x128xf32, #tpu.memory_space<vmem>>, %arg6: memref<8x128xf32, #tpu.memory_space<vmem>>) attributes {dimension_semantics = [#tpu.dimension_semantics<parallel>, #tpu.dimension_semantics<arbitrary>], iteration_bounds = array<i64: 1, 1>, scalar_prefetch = 0 : i64, scratch_operands = 0 : i64, tpu.core_type = #tpu.core_type<tc>, window_params = [{transform_indices = @transform_0, window_bounds = array<i64: 16, 128>}, {transform_indices = @transform_1, window_bounds = array<i64: 16, 128>}, {transform_indices = @transform_2, window_bounds = array<i64: 8, 128>}, {transform_indices = @transform_3, window_bounds = array<i64: 8, 128>}, {transform_indices = @transform_4, window_bounds = array<i64: 8, 128>}]} {
    %c0_i32 = arith.constant 0 : i32
    %0 = arith.cmpi eq, %arg1, %c0_i32 : i32
    %1 = arith.extui %0 : i1 to i32
    %c0_i32_0 = arith.constant 0 : i32
    %2 = arith.cmpi ne, %1, %c0_i32_0 : i32
    scf.if %2 {
      %cst_21 = arith.constant 0.000000e+00 : f32
      %36 = vector.broadcast %cst_21 : f32 to vector<8x128xf32>
      %c0_22 = arith.constant 0 : index
      %c0_23 = arith.constant 0 : index
      %37 = vector.load %arg4[%c0_22, %c0_23] : memref<8x128xf32, #tpu.memory_space<vmem>>, vector<8x128xf32>
      tpu.vector_store %arg4[%c0_22, %c0_23], %36 {strides = array<i32>} : memref<8x128xf32, #tpu.memory_space<vmem>>, vector<8x128xf32>,
      %cst_24 = arith.constant 0.000000e+00 : f32
      %38 = vector.broadcast %cst_24 : f32 to vector<8x128xf32>
      %c0_25 = arith.constant 0 : index
      %c0_26 = arith.constant 0 : index
      %39 = vector.load %arg5[%c0_25, %c0_26] : memref<8x128xf32, #tpu.memory_space<vmem>>, vector<8x128xf32>
      tpu.vector_store %arg5[%c0_25, %c0_26], %38 {strides = array<i32>} : memref<8x128xf32, #tpu.memory_space<vmem>>, vector<8x128xf32>,
      %cst_27 = arith.constant 0.000000e+00 : f32
      %40 = vector.broadcast %cst_27 : f32 to vector<8x128xf32>
      %c0_28 = arith.constant 0 : index
      %c0_29 = arith.constant 0 : index
      %41 = vector.load %arg6[%c0_28, %c0_29] : memref<8x128xf32, #tpu.memory_space<vmem>>, vector<8x128xf32>
      tpu.vector_store %arg6[%c0_28, %c0_29], %40 {strides = array<i32>} : memref<8x128xf32, #tpu.memory_space<vmem>>, vector<8x128xf32>,
    } else {
    }
    %cst = arith.constant 0.000000e+00 : f32
    %3 = vector.broadcast %cst : f32 to vector<8x128xf32>
    %c0_i32_1 = arith.constant 0 : i32
    %c16_i32 = arith.constant 16 : i32
    %4 = arith.muli %c0_i32_1, %c16_i32 : i32
    %5 = tpu.assume_multiple %4, 16 : i32
    %6 = arith.index_cast %5 : i32 to index
    %c0 = arith.constant 0 : index
    %7 = vector.load %arg2[%6, %c0] : memref<16x128xf32, #tpu.memory_space<vmem>>, vector<16x128xf32>
    %8 = arith.index_cast %5 : i32 to index
    %c0_2 = arith.constant 0 : index
    %9 = vector.load %arg3[%8, %c0_2] : memref<16x128xf32, #tpu.memory_space<vmem>>, vector<16x128xf32>
    %cst_3 = arith.constant 5.000000e-01 : f32
    %10 = vector.broadcast %cst_3 : f32 to vector<16x128xf32>
    %11 = arith.mulf %10, %7 : vector<16x128xf32>
    %12 = math.tanh %11 : vector<16x128xf32>
    %cst_4 = arith.constant 5.000000e-01 : f32
    %13 = vector.broadcast %cst_4 : f32 to vector<16x128xf32>
    %14 = arith.mulf %13, %12 : vector<16x128xf32>
    %cst_5 = arith.constant 5.000000e-01 : f32
    %15 = vector.broadcast %cst_5 : f32 to vector<16x128xf32>
    %16 = arith.addf %14, %15 : vector<16x128xf32>
    %17 = arith.mulf %16, %9 : vector<16x128xf32>
    %18 = vector.shape_cast %17 : vector<16x128xf32> to vector<2x8x128xf32>
    %cst_6 = arith.constant dense<0.000000e+00> : vector<8x128xf32>
    %19 = vector.multi_reduction <add>, %18, %cst_6 [0] : vector<2x8x128xf32> to vector<8x128xf32>
    %20 = arith.addf %3, %19 : vector<8x128xf32>
    %21 = vector.shape_cast %16 : vector<16x128xf32> to vector<2x8x128xf32>
    %cst_7 = arith.constant dense<0.000000e+00> : vector<8x128xf32>
    %22 = vector.multi_reduction <add>, %21, %cst_7 [0] : vector<2x8x128xf32> to vector<8x128xf32>
    %23 = arith.addf %3, %22 : vector<8x128xf32>
    %24 = vector.shape_cast %9 : vector<16x128xf32> to vector<2x8x128xf32>
    %cst_8 = arith.constant dense<0.000000e+00> : vector<8x128xf32>
    %25 = vector.multi_reduction <add>, %24, %cst_8 [0] : vector<2x8x128xf32> to vector<8x128xf32>
    %26 = arith.addf %3, %25 : vector<8x128xf32>
    %c1_i32 = arith.constant 1 : i32
    %c0_9 = arith.constant 0 : index
    %c0_10 = arith.constant 0 : index
    %27 = vector.load %arg4[%c0_9, %c0_10] : memref<8x128xf32, #tpu.memory_space<vmem>>, vector<8x128xf32>
    %28 = arith.addf %27, %20 : vector<8x128xf32>
    %c0_11 = arith.constant 0 : index
    %c0_12 = arith.constant 0 : index
    %29 = vector.load %arg4[%c0_11, %c0_12] : memref<8x128xf32, #tpu.memory_space<vmem>>, vector<8x128xf32>
    tpu.vector_store %arg4[%c0_11, %c0_12], %28 {strides = array<i32>} : memref<8x128xf32, #tpu.memory_space<vmem>>, vector<8x128xf32>,
    %c0_13 = arith.constant 0 : index
    %c0_14 = arith.constant 0 : index
    %30 = vector.load %arg5[%c0_13, %c0_14] : memref<8x128xf32, #tpu.memory_space<vmem>>, vector<8x128xf32>
    %31 = arith.addf %30, %23 : vector<8x128xf32>
    %c0_15 = arith.constant 0 : index
    %c0_16 = arith.constant 0 : index
    %32 = vector.load %arg5[%c0_15, %c0_16] : memref<8x128xf32, #tpu.memory_space<vmem>>, vector<8x128xf32>
    tpu.vector_store %arg5[%c0_15, %c0_16], %31 {strides = array<i32>} : memref<8x128xf32, #tpu.memory_space<vmem>>, vector<8x128xf32>,
    %c0_17 = arith.constant 0 : index
    %c0_18 = arith.constant 0 : index
    %33 = vector.load %arg6[%c0_17, %c0_18] : memref<8x128xf32, #tpu.memory_space<vmem>>, vector<8x128xf32>
    %34 = arith.addf %33, %26 : vector<8x128xf32>
    %c0_19 = arith.constant 0 : index
    %c0_20 = arith.constant 0 : index
    %35 = vector.load %arg6[%c0_19, %c0_20] : memref<8x128xf32, #tpu.memory_space<vmem>>, vector<8x128xf32>
    tpu.vector_store %arg6[%c0_19, %c0_20], %34 {strides = array<i32>} : memref<8x128xf32, #tpu.memory_space<vmem>>, vector<8x128xf32>,
    return
  }
  func.func @transform_0(%arg0: i32, %arg1: i32) -> (i32, i32) {
    %c1_i32 = arith.constant 1 : i32
    %0 = arith.muli %arg0, %c1_i32 : i32
    %1 = arith.addi %0, %arg1 : i32
    %c0_i32 = arith.constant 0 : i32
    %c0_i32_0 = arith.constant 0 : i32
    return %1, %c0_i32 : i32, i32
  }
  func.func @transform_1(%arg0: i32, %arg1: i32) -> (i32, i32) {
    %c1_i32 = arith.constant 1 : i32
    %0 = arith.muli %arg0, %c1_i32 : i32
    %1 = arith.addi %0, %arg1 : i32
    %c0_i32 = arith.constant 0 : i32
    %c0_i32_0 = arith.constant 0 : i32
    return %1, %c0_i32 : i32, i32
  }
  func.func @transform_2(%arg0: i32, %arg1: i32) -> (i32, i32) {
    %c0_i32 = arith.constant 0 : i32
    %c0_i32_0 = arith.constant 0 : i32
    return %arg0, %c0_i32 : i32, i32
  }
  func.func @transform_3(%arg0: i32, %arg1: i32) -> (i32, i32) {
    %c0_i32 = arith.constant 0 : i32
    %c0_i32_0 = arith.constant 0 : i32
    return %arg0, %c0_i32 : i32, i32
  }
  func.func @transform_4(%arg0: i32, %arg1: i32) -> (i32, i32) {
    %c0_i32 = arith.constant 0 : i32
    %c0_i32_0 = arith.constant 0 : i32
    return %arg0, %c0_i32 : i32, i32
  }
}

</mosaic_0001>

<bundles_post_ra>
// kernel: tpu_custom_call.1
= control target key start
LH: loop header
LB: loop body
LE: loop exit
PB: predicated region body
PF: predicated region fallthrough
CT: control target
= control target key end

     0   :  { %10 = vsyncpa [#allocation3], 0  ;;  %s371_s0 = inlined_call_operand.hbm [shape: f32[16,128], index: 0, kind: input, shape index: {}]   ;;  %s372_s1 = inlined_call_operand.hbm [shape: f32[16,128], index: 1, kind: input, shape index: {}]   ;;  %s373_s2 = inlined_call_operand.hbm [shape: f32[8,128], index: 2, kind: output, shape index: {0}]   ;;  %s374_s3 = inlined_call_operand.hbm [shape: f32[8,128], index: 3, kind: output, shape index: {1}]   ;;  %s375_s4 = inlined_call_operand.hbm [shape: f32[8,128], index: 4, kind: output, shape index: {2}]  }
   0x1   :  { %11 = vsyncpa [#allocation6], 0 }
   0x2   :  { %12 = vsyncpa [#allocation4], 0 }
   0x3   :  { %13 = vsyncpa [#allocation9], 0  ;;  %s265_s15 = smov [#allocation2]   ;;  %s147_s19 = scalar_lea.hbm %s371_s0, 256 }
   0x4   :  { %s23_s16 = sshll.u32 %s265_s15, 4  ;;  %p148_p0 = scmp.ne.s32.totalorder %s371_s0, %s147_s19  ;;  %s24_s16 = int_to_ptr.vmem [resolvable:$true] %s23_s16 }
   0x5   :  { %p151_p1 = scmp.lt.u32.totalorder %s147_s19, %s371_s0 }
   0x7   :  { %p153_p2 = pnand %p151_p1, %p148_p0 }
   0x9   :  { %156 = shalt.err (!%p153_p2)
}
   0xa   :  { %s157_s24 = scalar_lea.vmem %s24_s16, 256  ;;  %p162_p4 = scmp.lt.s32.totalorder %s24_s16, %s24_s16 }
   0xb   :  { %p158_p3 = scmp.ne.s32.totalorder %s24_s16, %s157_s24  ;;  %p163_p5 = scmp.lt.s32.totalorder %s157_s24, %s157_s24 }
   0xd   :  { %p164_p6 = por %p163_p5, %p162_p4 }
   0xf   :  { %p165_p7 = pnand %p164_p6, %p158_p3 }
  0x11   :  { %168 = shalt.err (!%p165_p7)
}
  0x12   :  { %s266_s25 = smov 128   ;;  %s267_s26 = smov 8  }
  0x13   :  { %29 = dma.hbm_to_vmem [thread:$0]  %s371_s0, 256, %s24_s16, [#allocation3], %s266_s25, %s266_s25, %s267_s26  }
  0x14   :  { %s268_s29 = smov [#allocation5]   ;;  %s169_s7 = scalar_lea.hbm %s372_s1, 256 }
  0x15   :  { %s39_s30 = sshll.u32 %s268_s29, 4  ;;  %p170_p8 = scmp.ne.s32.totalorder %s372_s1, %s169_s7  ;;  %s40_s30 = int_to_ptr.vmem [resolvable:$true] %s39_s30 }
  0x16   :  { %p173_p9 = scmp.lt.u32.totalorder %s169_s7, %s372_s1 }
  0x18   :  { %p175_p10 = pnand %p173_p9, %p170_p8 }
  0x1a   :  { %178 = shalt.err (!%p175_p10)
}
  0x1b   :  { %s179_s12 = scalar_lea.vmem %s40_s30, 256  ;;  %p184_p12 = scmp.lt.s32.totalorder %s40_s30, %s40_s30 }
  0x1c   :  { %p180_p11 = scmp.ne.s32.totalorder %s40_s30, %s179_s12  ;;  %p185_p13 = scmp.lt.s32.totalorder %s179_s12, %s179_s12 }
  0x1e   :  { %p186_p0 = por %p185_p13, %p184_p12 }
  0x20   :  { %p187_p1 = pnand %p186_p0, %p180_p11 }
  0x22   :  { %190 = shalt.err (!%p187_p1)
}
  0x23   :  { %45 = dma.hbm_to_vmem [thread:$0]  %s372_s1, 256, %s40_s30, [#allocation6], %s266_s25, %s266_s25, %s267_s26  }
  0x24   :  { %257 = dma.done.wait [#allocation3], 256  }
  0x25   :  { %258 = vsyncadd [#allocation3], 4294967040 }
  0x26   :  { %259 = dma.done.wait [#allocation6], 256  }
  0x27   :  { %260 = vsyncadd [#allocation6], 4294967040  ;;  %v63_v0 = vld [vmem:[#allocation2] sm:$0xff]  ;;  %v64_v1 = vld [vmem:[#allocation2 + $0x8] sm:$0xff]  ;;  %s269_s1 = smov [#allocation8]   ;;  %s270_s15 = smov [#allocation10]  }
  0x28   :  { %v67_v2 = vmul.f32 0.5, %v63_v0  ;;  %v68_v3 = vmul.f32 0.5, %v64_v1  ;;  %v65_v4 = vld [vmem:[#allocation5] sm:$0xff]  ;;  %v66_v5 = vld [vmem:[#allocation5 + $0x8] sm:$0xff]  ;;  %s108_s14 = sshll.u32 %s269_s1, 4  ;;  %s118_s16 = sshll.u32 %s270_s15, 4  ;;  %s109_s14 = int_to_ptr.vmem [resolvable:$true] %s108_s14  ;;  %s321_s16 = int_to_ptr.vmem [resolvable:$true] %s118_s16 }
  0x29   :  { %v81_v6 = vadd.f32 %v66_v5, %v65_v4  ;;  %s271_s17 = smov [#allocation7]   ;;  %s191_s19 = scalar_lea.vmem %s109_s14, 128 }
  0x2a   :  { %143 = vtanh.f32 %v67_v2  ;;  %s98_s18 = sshll.u32 %s271_s17, 4  ;;  %p192_p2 = scmp.ne.s32.totalorder %s109_s14, %s191_s19  ;;  %s323_s18 = int_to_ptr.vmem [resolvable:$true] %s98_s18 }
  0x2b   :  { %145 = vtanh.f32 %v68_v3  ;;  %91 = vst [vmem:[#allocation10] sm:$0xff] %v81_v6  ;;  %p196_p3 = scmp.lt.s32.totalorder %s109_s14, %s109_s14  ;;  %p197_p4 = scmp.lt.s32.totalorder %s191_s19, %s191_s19 }
  0x2d   :  { %p198_p5 = por %p197_p4, %p196_p3 }
  0x2f   :  { %p199_p6 = pnand %p198_p5, %p192_p2 }
  0x34   :  { %v144_v7 = vpop.eup %143 }
  0x35   :  { %v146_v8 = vpop.eup %145  ;;  %v71_v9 = vmul.f32 0.5, %v144_v7 }
  0x36   :  { %v72_v10 = vmul.f32 0.5, %v146_v8 }
  0x37   :  { %v73_v11 = vadd.f32 0.5, %v71_v9 }
  0x38   :  { %v74_v12 = vadd.f32 0.5, %v72_v10 }
  0x39   :  { %v75_v13 = vmul.f32 %v73_v11, %v65_v4 }
  0x3a   :  { %v79_v14 = vadd.f32 %v74_v12, %v73_v11  ;;  %v76_v15 = vmul.f32 %v74_v12, %v66_v5 }
  0x3c   :  { %v77_v16 = vadd.f32 %v76_v15, %v75_v13  ;;  %88 = vst [vmem:[#allocation8] sm:$0xff] %v79_v14 }
  0x3d   :  { %202 = shalt.err (!%p199_p6)
}
  0x3e   :  { %s203_s22 = scalar_lea.hbm %s374_s3, 128 }
  0x3f   :  { %p204_p7 = scmp.ne.s32.totalorder %s374_s3, %s203_s22  ;;  %p207_p8 = scmp.lt.u32.totalorder %s203_s22, %s374_s3 }
  0x41   :  { %p209_p9 = pnand %p207_p8, %p204_p7 }
  0x43   :  { %212 = shalt.err (!%p209_p9)
}
  0x44   :  { %111 = dma.vmem_to_hbm [thread:$0]  %s109_s14, 128, %s374_s3, [#allocation9]   ;;  %85 = vst [vmem:[#allocation7] sm:$0xff] %v77_v16 }
  0x45   :  { %s213_s29 = scalar_lea.vmem %s321_s16, 128  ;;  %p218_p11 = scmp.lt.s32.totalorder %s321_s16, %s321_s16 }
  0x46   :  { %p214_p10 = scmp.ne.s32.totalorder %s321_s16, %s213_s29  ;;  %p219_p12 = scmp.lt.s32.totalorder %s213_s29, %s213_s29 }
  0x48   :  { %p220_p13 = por %p219_p12, %p218_p11 }
  0x4a   :  { %p221_p0 = pnand %p220_p13, %p214_p10 }
  0x4c   :  { %224 = shalt.err (!%p221_p0)
}
  0x4d   :  { %s225_s6 = scalar_lea.hbm %s375_s4, 128 }
  0x4e   :  { %p226_p1 = scmp.ne.s32.totalorder %s375_s4, %s225_s6  ;;  %p229_p2 = scmp.lt.u32.totalorder %s225_s6, %s375_s4 }
  0x50   :  { %p231_p3 = pnand %p229_p2, %p226_p1 }
  0x52   :  { %234 = shalt.err (!%p231_p3)
}
  0x53   :  { %121 = dma.vmem_to_hbm [thread:$0]  %s321_s16, 128, %s375_s4, [#allocation9]  }
  0x54   :  { %s235_s12 = scalar_lea.vmem %s323_s18, 128  ;;  %p240_p5 = scmp.lt.s32.totalorder %s323_s18, %s323_s18 }
  0x55   :  { %p236_p4 = scmp.ne.s32.totalorder %s323_s18, %s235_s12  ;;  %p241_p6 = scmp.lt.s32.totalorder %s235_s12, %s235_s12 }
  0x57   :  { %p242_p7 = por %p241_p6, %p240_p5 }
  0x59   :  { %p243_p8 = pnand %p242_p7, %p236_p4 }
  0x5b   :  { %246 = shalt.err (!%p243_p8)
}
  0x5c   :  { %s247_s1 = scalar_lea.hbm %s373_s2, 128 }
  0x5d   :  { %p248_p9 = scmp.ne.s32.totalorder %s373_s2, %s247_s1  ;;  %p251_p10 = scmp.lt.u32.totalorder %s247_s1, %s373_s2 }
  0x5f   :  { %p253_p11 = pnand %p251_p10, %p248_p9 }
  0x61   :  { %256 = shalt.err (!%p253_p11)
}
  0x62   :  { %101 = dma.vmem_to_hbm [thread:$0]  %s323_s18, 128, %s373_s2, [#allocation4]  }
  0x63   :  { %261 = dma.done.wait [#allocation4], 128  }
  0x64   :  { %262 = vsyncadd [#allocation4], 4294967168 }
  0x65   :  { %263 = dma.done.wait [#allocation9], 256  }
  0x66   :  { %264 = vsyncadd [#allocation9], 4294967040 }
  0x67   :  { %131 = vsyncpa [#allocation3], 1 }
  0x68   :  { %132 = vsyncpa [#allocation6], 1 }
  0x69   :  { %133 = vsyncpa [#allocation4], 1 }
  0x6a   :  { %134 = vsyncpa [#allocation9], 1 }

</bundles_post_ra>
